<compile_context>
chip_gen: v7x
topology: tpu7x:2x2x1
jax: 0.10.0
libtpu: 0.0.40
codegen_flags: <defaults>
</compile_context>

<pallas_src>
import functools

import jax
import jax.numpy as jnp
from jax.experimental import pallas as pl
from jax.experimental.pallas import tpu as pltpu

# Dataset-derived constants from the original script (MovieLens ratings 1..5).
MAX_RATING = 5.0
MIN_RATING = 1.0

EMBED_SIZE = 30                  # args.embed_size
MLP_LAYERS = [60, 32, 16, 8]     # config['layers']

SEG = 32                         # each 30-wide embedding segment padded to 32
LANE = 128


def _round_up(x, m):
    return (x + m - 1) // m * m


def _default_tile_config():
    """Generation-aware (batch_tile, vmem_limit_bytes)."""
    vmem_bytes = 0
    try:
        vmem_bytes = int(pltpu.get_tpu_info().vmem_capacity_bytes)
    except Exception:
        pass
    if vmem_bytes >= (100 << 20):        # v5e / v6e: 128 MiB VMEM per core
        return 32768, 96 << 20
    # v7x (64 MiB per TensorCore) or unknown: conservative settings, safe everywhere.
    return 16384, 44 << 20


def ncf_kernel(u_ref, m_ref,             # (64, TB) bf16 feature-major embedding slabs
               w1u_ref, w1m_ref, b1_ref,  # (32, 32) bf16 x2 (zero cols at pad), (32,1) f32
               w2t_ref, b2_ref,           # (16, 32) bf16, (16, 1) f32
               w3t_ref, b3_ref,           # (8, 16)  bf16, (8, 1)  f32
               wa_mlp_ref,                # (1, 8)  bf16  (rating rescale folded in)
               wa_mf_ref,                 # (1, 32) bf16  (zero cols at pad, rescale folded)
               ba_ref,                    # (1, 1)  f32   (rescale + shift folded in)
               out_ref):                  # (1, 1, TB) f32 — lane-dense output block
    u_mlp = u_ref[0:SEG, :]               # (32, TB) bf16
    m_mlp = m_ref[0:SEG, :]
    u_mf = u_ref[SEG:2 * SEG, :]
    m_mf = m_ref[SEG:2 * SEG, :]

    # --- MLP branch: Linear(60->32) split across the user/movie slabs, then 32->16->8.
    h = (jnp.dot(w1u_ref[...], u_mlp, preferred_element_type=jnp.float32)
         + jnp.dot(w1m_ref[...], m_mlp, preferred_element_type=jnp.float32)
         + b1_ref[...])
    h = jnp.maximum(h, 0.0).astype(jnp.bfloat16)                   # (32, TB)
    h = jnp.dot(w2t_ref[...], h, preferred_element_type=jnp.float32) + b2_ref[...]
    h = jnp.maximum(h, 0.0).astype(jnp.bfloat16)                   # (16, TB)
    h = jnp.dot(w3t_ref[...], h, preferred_element_type=jnp.float32) + b3_ref[...]
    h = jnp.maximum(h, 0.0).astype(jnp.bfloat16)                   # (8, TB)

    # --- MF branch: bf16 elementwise product (pad rows are exactly 0).
    mf = u_mf * m_mf                                               # (32, TB) bf16

    # --- Affine head on the (otherwise idle) MXU; rating rescale already folded in.
    logits = (jnp.dot(wa_mlp_ref[...], h, preferred_element_type=jnp.float32)
              + jnp.dot(wa_mf_ref[...], mf, preferred_element_type=jnp.float32)
              + ba_ref[...])                                       # (1, TB) f32
    out_ref[...] = logits.reshape(out_ref.shape)                   # unmasked lane-dense vst


def prepare_kernel_params(params):
    """One-time weight/table prep: feature-major bf16 embedding tables (zero-padded
    30->32), transposed/split/padded MXU weights, rating rescale folded into the head."""
    bf16, f32 = jnp.bfloat16, jnp.float32
    d_mlp = MLP_LAYERS[-1]                       # 8
    scale = MAX_RATING - MIN_RATING + 1.0
    shift = MIN_RATING - 1.0

    def feat_major(table):                       # (rows, 30) -> (32, rows) bf16
        t = table.T.astype(bf16)
        return jnp.pad(t, ((0, SEG - EMBED_SIZE), (0, 0)))

    user_fm = jnp.concatenate(
        [feat_major(params["user_emb_mlp"]), feat_major(params["user_emb_mf"])], axis=0)
    movie_fm = jnp.concatenate(
        [feat_major(params["movie_emb_mlp"]), feat_major(params["movie_emb_mf"])], axis=0)

    w1t = params["w1"].T                         # (32, 60)
    zcol = jnp.zeros((MLP_LAYERS[1], SEG - EMBED_SIZE), f32)       # (32, 2)
    w1u_t = jnp.concatenate([w1t[:, :EMBED_SIZE], zcol], axis=1)   # (32, 32)
    w1m_t = jnp.concatenate([w1t[:, EMBED_SIZE:], zcol], axis=1)   # (32, 32)

    wa = params["wa"] * scale                    # fold rating rescale into the head
    wa_mlp = wa[:d_mlp, 0].reshape(1, d_mlp)                       # (1, 8)
    wa_mf = jnp.pad(wa[d_mlp:, 0].reshape(1, EMBED_SIZE),
                    ((0, 0), (0, SEG - EMBED_SIZE)))               # (1, 32)
    ba = (params["ba"] * scale + shift).reshape(1, 1)

    return {
        "user_fm": user_fm,                      # (64, num_users)  bf16
        "movie_fm": movie_fm,                    # (64, num_movies) bf16
        "w1u_t": w1u_t.astype(bf16), "w1m_t": w1m_t.astype(bf16),
        "b1": params["b1"].reshape(-1, 1).astype(f32),
        "w2t": params["w2"].T.astype(bf16),
        "b2": params["b2"].reshape(-1, 1).astype(f32),
        "w3t": params["w3"].T.astype(bf16),
        "b3": params["b3"].reshape(-1, 1).astype(f32),
        "wa_mlp": wa_mlp.astype(bf16),
        "wa_mf": wa_mf.astype(bf16),
        "ba": ba.astype(f32),
    }


@functools.partial(jax.jit, static_argnames=("block_rows", "vmem_limit_bytes"))
def _neural_cf_forward_impl(train_data, kparams, *, block_rows, vmem_limit_bytes):
    u_idx = train_data[:, 0]
    m_idx = train_data[:, 1]
    batch = train_data.shape[0]

    # Tile sizing: 128-aligned tiles, capped per generation, and >=4 tiles whenever the
    # batch allows it so megacore sharding and DMA/compute overlap stay engaged.
    block_rows = max(LANE, (block_rows // LANE) * LANE)
    lane_pad = _round_up(max(batch, 1), LANE)
    n_tiles = max(pl.cdiv(lane_pad, block_rows), min(4, lane_pad // LANE), 1)
    tb = _round_up(pl.cdiv(lane_pad, n_tiles), LANE)
    b_pad = n_tiles * tb

    # Pad the cheap int32 index vectors (not the gathered slabs).
    pad = b_pad - batch
    u_idx_p = jnp.pad(u_idx, (0, pad))
    m_idx_p = jnp.pad(m_idx, (0, pad))

    # Feature-major tables: gather along the last axis directly yields the lane-dense
    # (64, b_pad) feature-major slabs — no transpose, no extra HBM round trip.
    u_slab = jnp.take(kparams["user_fm"], u_idx_p, axis=1)
    m_slab = jnp.take(kparams["movie_fm"], m_idx_p, axis=1)

    weight_args = (kparams["w1u_t"], kparams["w1m_t"], kparams["b1"],
                   kparams["w2t"], kparams["b2"],
                   kparams["w3t"], kparams["b3"],
                   kparams["wa_mlp"], kparams["wa_mf"], kparams["ba"])

    in_specs = [pl.BlockSpec((2 * SEG, tb), lambda i: (0, i)),
                pl.BlockSpec((2 * SEG, tb), lambda i: (0, i))]
    # Tiny weights/biases: full-array blocks with constant index_map -> stay resident.
    in_specs += [pl.BlockSpec(w.shape, lambda i: (0, 0)) for w in weight_args]

    out = pl.pallas_call(
        ncf_kernel,
        grid=(n_tiles,),
        in_specs=in_specs,
        out_specs=pl.BlockSpec((1, 1, tb), lambda i: (i, 0, 0)),
        out_shape=jax.ShapeDtypeStruct((n_tiles, 1, tb), jnp.float32),
        compiler_params=pltpu.CompilerParams(
            # Batch tiles are independent -> shard across TensorCores (v7x megacore).
            dimension_semantics=("parallel",),
            vmem_limit_bytes=vmem_limit_bytes,
            # Allow XLA to fuse the gather producers into the slab operands.
            allow_input_fusion=[True, True] + [False] * len(weight_args),
        ),
    )(u_slab, m_slab, *weight_args)

    return out.reshape(-1)[:batch]


def neural_cf_forward(train_data, kparams, *, block_rows=None, vmem_limit_bytes=None):
    """train_data: int32 (B, 2) with [user_id, movie_id]. Returns float32 (B,) logits."""
    if block_rows is None or vmem_limit_bytes is None:
        br, vl = _default_tile_config()
        block_rows = block_rows if block_rows is not None else br
        vmem_limit_bytes = vmem_limit_bytes if vmem_limit_bytes is not None else vl
    return _neural_cf_forward_impl(train_data, kparams,
                                   block_rows=int(block_rows),
                                   vmem_limit_bytes=int(vmem_limit_bytes))


def init_params(key, num_users, num_movies):
    ks = jax.random.split(key, 12)

    def unif(k, shape, lo, hi):
        return jax.random.uniform(k, shape, jnp.float32, lo, hi)

    params = {
        # Embeddings: uniform(-0.1, 0.1) as in the PyTorch __init__.
        "user_emb_mlp": unif(ks[0], (num_users, EMBED_SIZE), -0.1, 0.1),
        "movie_emb_mlp": unif(ks[1], (num_movies, EMBED_SIZE), -0.1, 0.1),
        "user_emb_mf": unif(ks[2], (num_users, EMBED_SIZE), -0.1, 0.1),
        "movie_emb_mf": unif(ks[3], (num_movies, EMBED_SIZE), -0.1, 0.1),
    }
    # Linear layers stored as (in, out) so the math is x @ W + b.
    dims = list(zip(MLP_LAYERS[:-1], MLP_LAYERS[1:]))  # (60,32),(32,16),(16,8)
    for i, (din, dout) in enumerate(dims, start=1):
        bound = 1.0 / (din ** 0.5)  # PyTorch nn.Linear default init range
        params[f"w{i}"] = unif(ks[3 + 2 * i - 1], (din, dout), -bound, bound)
        params[f"b{i}"] = unif(ks[3 + 2 * i], (dout,), -bound, bound)
    din_a = MLP_LAYERS[-1] + EMBED_SIZE  # 8 + 30 = 38
    bound = 1.0 / (din_a ** 0.5)
    params["wa"] = unif(ks[10], (din_a, 1), -bound, bound)
    params["ba"] = unif(ks[11], (1,), -bound, bound)
    return params


def reference_forward(train_data, params):
    """Pure-JAX reference mirroring the kernel's bf16 quantization points exactly
    (embeddings, MXU weight operands, inter-layer activations, MF product, folded
    head weights); dropout omitted."""
    f32, bf16 = jnp.float32, jnp.bfloat16
    q = lambda a: a.astype(bf16).astype(f32)
    u_idx, m_idx = train_data[:, 0], train_data[:, 1]
    u = q(jnp.take(params["user_emb_mlp"], u_idx, axis=0))
    mm = q(jnp.take(params["movie_emb_mlp"], m_idx, axis=0))
    uf = q(jnp.take(params["user_emb_mf"], u_idx, axis=0))
    mv = q(jnp.take(params["movie_emb_mf"], m_idx, axis=0))

    h = jnp.concatenate([u, mm], axis=-1)
    for i in (1, 2, 3):
        h = q(jnp.maximum(h @ q(params[f"w{i}"]) + params[f"b{i}"], 0.0))
    mf = q(uf * mv)   # kernel computes the MF product in bf16

    d_mlp = MLP_LAYERS[-1]
    scale = MAX_RATING - MIN_RATING + 1.0
    shift = MIN_RATING - 1.0
    wa_mlp = q(params["wa"][:d_mlp, 0] * scale)    # rescale folded + bf16, as in kernel
    wa_mf = q(params["wa"][d_mlp:, 0] * scale)
    ba = params["ba"][0] * scale + shift
    return h @ wa_mlp + mf @ wa_mf + ba


if __name__ == "__main__":
    key = jax.random.PRNGKey(0)
    k_param, k_u, k_m = jax.random.split(key, 3)

    num_users, num_movies, batch = 64, 96, 500
    params = init_params(k_param, num_users, num_movies)
    kparams = prepare_kernel_params(params)   # hoisted one-time weight/table prep

    user_ids = jax.random.randint(k_u, (batch, 1), 0, num_users, dtype=jnp.int32)
    movie_ids = jax.random.randint(k_m, (batch, 1), 0, num_movies, dtype=jnp.int32)
    train_data = jnp.concatenate([user_ids, movie_ids], axis=1)   # (B, 2) int32

    # batch=500 -> padded to 512 and split into 4 x 128-row tiles, so the pipelined
    # grid (and the padding path) is exercised even at this small demo size.
    out = neural_cf_forward(train_data, kparams)
    out = jax.block_until_ready(out)

    ref = reference_forward(train_data, params)
    assert out.shape == (batch,)
    assert out.dtype == jnp.float32
    max_err = jnp.max(jnp.abs(out - ref))
    assert jnp.allclose(out, ref, atol=5e-3, rtol=5e-3), f"max abs err {max_err}"
    print("KERNEL_OK")
</pallas_src>

<mosaic_0001>
module attributes {stable_mosaic.version = 11 : i64} {
  func.func @ncf_kernel(%arg0: i32, %arg1: memref<64x128xbf16, #tpu.memory_space<vmem>>, %arg2: memref<64x128xbf16, #tpu.memory_space<vmem>>, %arg3: memref<32x32xbf16, #tpu.memory_space<vmem>>, %arg4: memref<32x32xbf16, #tpu.memory_space<vmem>>, %arg5: memref<32x1xf32, #tpu.memory_space<vmem>>, %arg6: memref<16x32xbf16, #tpu.memory_space<vmem>>, %arg7: memref<16x1xf32, #tpu.memory_space<vmem>>, %arg8: memref<8x16xbf16, #tpu.memory_space<vmem>>, %arg9: memref<8x1xf32, #tpu.memory_space<vmem>>, %arg10: memref<1x8xbf16, #tpu.memory_space<vmem>>, %arg11: memref<1x32xbf16, #tpu.memory_space<vmem>>, %arg12: memref<1x1xf32, #tpu.memory_space<vmem>>, %arg13: memref<1x1x128xf32, #tpu.memory_space<vmem>>) attributes {dimension_semantics = [#tpu.dimension_semantics<parallel>], iteration_bounds = array<i64: 4>, scalar_prefetch = 0 : i64, scratch_operands = 0 : i64, tpu.core_type = #tpu.core_type<tc>, window_params = [{transform_indices = @transform_0, window_bounds = array<i64: 64, 128>}, {transform_indices = @transform_1, window_bounds = array<i64: 64, 128>}, {pipeline_mode = #tpu.pipeline_mode<synchronous>, transform_indices = @transform_2, window_bounds = array<i64: 32, 32>}, {pipeline_mode = #tpu.pipeline_mode<synchronous>, transform_indices = @transform_3, window_bounds = array<i64: 32, 32>}, {pipeline_mode = #tpu.pipeline_mode<synchronous>, transform_indices = @transform_4, window_bounds = array<i64: 32, 1>}, {pipeline_mode = #tpu.pipeline_mode<synchronous>, transform_indices = @transform_5, window_bounds = array<i64: 16, 32>}, {pipeline_mode = #tpu.pipeline_mode<synchronous>, transform_indices = @transform_6, window_bounds = array<i64: 16, 1>}, {pipeline_mode = #tpu.pipeline_mode<synchronous>, transform_indices = @transform_7, window_bounds = array<i64: 8, 16>}, {pipeline_mode = #tpu.pipeline_mode<synchronous>, transform_indices = @transform_8, window_bounds = array<i64: 8, 1>}, {pipeline_mode = #tpu.pipeline_mode<synchronous>, transform_indices = @transform_9, window_bounds = array<i64: 1, 8>}, {pipeline_mode = #tpu.pipeline_mode<synchronous>, transform_indices = @transform_10, window_bounds = array<i64: 1, 32>}, {pipeline_mode = #tpu.pipeline_mode<synchronous>, transform_indices = @transform_11, window_bounds = array<i64: 1, 1>}, {transform_indices = @transform_12, window_bounds = array<i64: 1, 1, 128>}]} {
    %c0 = arith.constant 0 : index
    %c0_0 = arith.constant 0 : index
    %0 = vector.load %arg1[%c0, %c0_0] : memref<64x128xbf16, #tpu.memory_space<vmem>>, vector<32x128xbf16>
    %c0_1 = arith.constant 0 : index
    %c0_2 = arith.constant 0 : index
    %1 = vector.load %arg2[%c0_1, %c0_2] : memref<64x128xbf16, #tpu.memory_space<vmem>>, vector<32x128xbf16>
    %c32 = arith.constant 32 : index
    %c0_3 = arith.constant 0 : index
    %2 = vector.load %arg1[%c32, %c0_3] : memref<64x128xbf16, #tpu.memory_space<vmem>>, vector<32x128xbf16>
    %c32_4 = arith.constant 32 : index
    %c0_5 = arith.constant 0 : index
    %3 = vector.load %arg2[%c32_4, %c0_5] : memref<64x128xbf16, #tpu.memory_space<vmem>>, vector<32x128xbf16>
    %c0_6 = arith.constant 0 : index
    %c0_7 = arith.constant 0 : index
    %4 = vector.load %arg3[%c0_6, %c0_7] : memref<32x32xbf16, #tpu.memory_space<vmem>>, vector<32x32xbf16>
    %cst = arith.constant dense<0.000000e+00> : vector<32x128xf32>
    %5 = tpu.matmul %4, %0, %cst {dimension_numbers = #tpu.dot_dimension_numbers<[1], [0], [0], [1], [0, 0, 1, 1], [], []>} : vector<32x32xbf16>, vector<32x128xbf16>, vector<32x128xf32> -> vector<32x128xf32>
    %c0_8 = arith.constant 0 : index
    %c0_9 = arith.constant 0 : index
    %6 = vector.load %arg4[%c0_8, %c0_9] : memref<32x32xbf16, #tpu.memory_space<vmem>>, vector<32x32xbf16>
    %cst_10 = arith.constant dense<0.000000e+00> : vector<32x128xf32>
    %7 = tpu.matmul %6, %1, %cst_10 {dimension_numbers = #tpu.dot_dimension_numbers<[1], [0], [0], [1], [0, 0, 1, 1], [], []>} : vector<32x32xbf16>, vector<32x128xbf16>, vector<32x128xf32> -> vector<32x128xf32>
    %8 = arith.addf %5, %7 : vector<32x128xf32>
    %c0_11 = arith.constant 0 : index
    %c0_12 = arith.constant 0 : index
    %9 = vector.load %arg5[%c0_11, %c0_12] : memref<32x1xf32, #tpu.memory_space<vmem>>, vector<32x1xf32>
    %10 = vector.broadcast %9 : vector<32x1xf32> to vector<32x128xf32>
    %11 = arith.addf %8, %10 : vector<32x128xf32>
    %cst_13 = arith.constant 0.000000e+00 : f32
    %12 = vector.broadcast %cst_13 : f32 to vector<32x128xf32>
    %13 = arith.maximumf %11, %12 : vector<32x128xf32>
    %14 = arith.truncf %13 : vector<32x128xf32> to vector<32x128xbf16>
    %c0_14 = arith.constant 0 : index
    %c0_15 = arith.constant 0 : index
    %15 = vector.load %arg6[%c0_14, %c0_15] : memref<16x32xbf16, #tpu.memory_space<vmem>>, vector<16x32xbf16>
    %cst_16 = arith.constant dense<0.000000e+00> : vector<16x128xf32>
    %16 = tpu.matmul %15, %14, %cst_16 {dimension_numbers = #tpu.dot_dimension_numbers<[1], [0], [0], [1], [0, 0, 1, 1], [], []>} : vector<16x32xbf16>, vector<32x128xbf16>, vector<16x128xf32> -> vector<16x128xf32>
    %c0_17 = arith.constant 0 : index
    %c0_18 = arith.constant 0 : index
    %17 = vector.load %arg7[%c0_17, %c0_18] : memref<16x1xf32, #tpu.memory_space<vmem>>, vector<16x1xf32>
    %18 = vector.broadcast %17 : vector<16x1xf32> to vector<16x128xf32>
    %19 = arith.addf %16, %18 : vector<16x128xf32>
    %cst_19 = arith.constant 0.000000e+00 : f32
    %20 = vector.broadcast %cst_19 : f32 to vector<16x128xf32>
    %21 = arith.maximumf %19, %20 : vector<16x128xf32>
    %22 = arith.truncf %21 : vector<16x128xf32> to vector<16x128xbf16>
    %c0_20 = arith.constant 0 : index
    %c0_21 = arith.constant 0 : index
    %23 = vector.load %arg8[%c0_20, %c0_21] : memref<8x16xbf16, #tpu.memory_space<vmem>>, vector<8x16xbf16>
    %cst_22 = arith.constant dense<0.000000e+00> : vector<8x128xf32>
    %24 = tpu.matmul %23, %22, %cst_22 {dimension_numbers = #tpu.dot_dimension_numbers<[1], [0], [0], [1], [0, 0, 1, 1], [], []>} : vector<8x16xbf16>, vector<16x128xbf16>, vector<8x128xf32> -> vector<8x128xf32>
    %c0_23 = arith.constant 0 : index
    %c0_24 = arith.constant 0 : index
    %25 = vector.load %arg9[%c0_23, %c0_24] : memref<8x1xf32, #tpu.memory_space<vmem>>, vector<8x1xf32>
    %26 = vector.broadcast %25 : vector<8x1xf32> to vector<8x128xf32>
    %27 = arith.addf %24, %26 : vector<8x128xf32>
    %cst_25 = arith.constant 0.000000e+00 : f32
    %28 = vector.broadcast %cst_25 : f32 to vector<8x128xf32>
    %29 = arith.maximumf %27, %28 : vector<8x128xf32>
    %30 = arith.truncf %29 : vector<8x128xf32> to vector<8x128xbf16>
    %31 = arith.mulf %2, %3 : vector<32x128xbf16>
    %c0_26 = arith.constant 0 : index
    %c0_27 = arith.constant 0 : index
    %32 = vector.load %arg10[%c0_26, %c0_27] : memref<1x8xbf16, #tpu.memory_space<vmem>>, vector<1x8xbf16>
    %cst_28 = arith.constant dense<0.000000e+00> : vector<1x128xf32>
    %33 = tpu.matmul %32, %30, %cst_28 {dimension_numbers = #tpu.dot_dimension_numbers<[1], [0], [0], [1], [0, 0, 1, 1], [], []>} : vector<1x8xbf16>, vector<8x128xbf16>, vector<1x128xf32> -> vector<1x128xf32>
    %c0_29 = arith.constant 0 : index
    %c0_30 = arith.constant 0 : index
    %34 = vector.load %arg11[%c0_29, %c0_30] : memref<1x32xbf16, #tpu.memory_space<vmem>>, vector<1x32xbf16>
    %cst_31 = arith.constant dense<0.000000e+00> : vector<1x128xf32>
    %35 = tpu.matmul %34, %31, %cst_31 {dimension_numbers = #tpu.dot_dimension_numbers<[1], [0], [0], [1], [0, 0, 1, 1], [], []>} : vector<1x32xbf16>, vector<32x128xbf16>, vector<1x128xf32> -> vector<1x128xf32>
    %36 = arith.addf %33, %35 : vector<1x128xf32>
    %c0_32 = arith.constant 0 : index
    %c0_33 = arith.constant 0 : index
    %37 = vector.load %arg12[%c0_32, %c0_33] : memref<1x1xf32, #tpu.memory_space<vmem>>, vector<1x1xf32>
    %38 = vector.broadcast %37 : vector<1x1xf32> to vector<1x128xf32>
    %39 = arith.addf %36, %38 : vector<1x128xf32>
    %40 = vector.shape_cast %39 : vector<1x128xf32> to vector<1x1x128xf32>
    %c0_34 = arith.constant 0 : index
    %c0_35 = arith.constant 0 : index
    %c0_36 = arith.constant 0 : index
    %41 = vector.load %arg13[%c0_34, %c0_35, %c0_36] : memref<1x1x128xf32, #tpu.memory_space<vmem>>, vector<1x1x128xf32>
    tpu.vector_store %arg13[%c0_34, %c0_35, %c0_36], %40 {strides = array<i32>} : memref<1x1x128xf32, #tpu.memory_space<vmem>>, vector<1x1x128xf32>,
    return
  }
  func.func @transform_0(%arg0: i32) -> (i32, i32) {
    %c0_i32 = arith.constant 0 : i32
    %c0_i32_0 = arith.constant 0 : i32
    return %c0_i32, %arg0 : i32, i32
  }
  func.func @transform_1(%arg0: i32) -> (i32, i32) {
    %c0_i32 = arith.constant 0 : i32
    %c0_i32_0 = arith.constant 0 : i32
    return %c0_i32, %arg0 : i32, i32
  }
  func.func @transform_2(%arg0: i32) -> (i32, i32) {
    %c0_i32 = arith.constant 0 : i32
    %c0_i32_0 = arith.constant 0 : i32
    %c0_i32_1 = arith.constant 0 : i32
    return %c0_i32, %c0_i32_0 : i32, i32
  }
  func.func @transform_3(%arg0: i32) -> (i32, i32) {
    %c0_i32 = arith.constant 0 : i32
    %c0_i32_0 = arith.constant 0 : i32
    %c0_i32_1 = arith.constant 0 : i32
    return %c0_i32, %c0_i32_0 : i32, i32
  }
  func.func @transform_4(%arg0: i32) -> (i32, i32) {
    %c0_i32 = arith.constant 0 : i32
    %c0_i32_0 = arith.constant 0 : i32
    %c0_i32_1 = arith.constant 0 : i32
    return %c0_i32, %c0_i32_0 : i32, i32
  }
  func.func @transform_5(%arg0: i32) -> (i32, i32) {
    %c0_i32 = arith.constant 0 : i32
    %c0_i32_0 = arith.constant 0 : i32
    %c0_i32_1 = arith.constant 0 : i32
    return %c0_i32, %c0_i32_0 : i32, i32
  }
  func.func @transform_6(%arg0: i32) -> (i32, i32) {
    %c0_i32 = arith.constant 0 : i32
    %c0_i32_0 = arith.constant 0 : i32
    %c0_i32_1 = arith.constant 0 : i32
    return %c0_i32, %c0_i32_0 : i32, i32
  }
  func.func @transform_7(%arg0: i32) -> (i32, i32) {
    %c0_i32 = arith.constant 0 : i32
    %c0_i32_0 = arith.constant 0 : i32
    %c0_i32_1 = arith.constant 0 : i32
    return %c0_i32, %c0_i32_0 : i32, i32
  }
  func.func @transform_8(%arg0: i32) -> (i32, i32) {
    %c0_i32 = arith.constant 0 : i32
    %c0_i32_0 = arith.constant 0 : i32
    %c0_i32_1 = arith.constant 0 : i32
    return %c0_i32, %c0_i32_0 : i32, i32
  }
  func.func @transform_9(%arg0: i32) -> (i32, i32) {
    %c0_i32 = arith.constant 0 : i32
    %c0_i32_0 = arith.constant 0 : i32
    %c0_i32_1 = arith.constant 0 : i32
    return %c0_i32, %c0_i32_0 : i32, i32
  }
  func.func @transform_10(%arg0: i32) -> (i32, i32) {
    %c0_i32 = arith.constant 0 : i32
    %c0_i32_0 = arith.constant 0 : i32
    %c0_i32_1 = arith.constant 0 : i32
    return %c0_i32, %c0_i32_0 : i32, i32
  }
  func.func @transform_11(%arg0: i32) -> (i32, i32) {
    %c0_i32 = arith.constant 0 : i32
    %c0_i32_0 = arith.constant 0 : i32
    %c0_i32_1 = arith.constant 0 : i32
    return %c0_i32, %c0_i32_0 : i32, i32
  }
  func.func @transform_12(%arg0: i32) -> (i32, i32, i32) {
    %c0_i32 = arith.constant 0 : i32
    %c0_i32_0 = arith.constant 0 : i32
    %c0_i32_1 = arith.constant 0 : i32
    return %arg0, %c0_i32, %c0_i32_0 : i32, i32, i32
  }
}

</mosaic_0001>

<bundles_post_ra>
// kernel: _neural_cf_forward_impl.2
= control target key start
LH: loop header
LB: loop body
LE: loop exit
PB: predicated region body
PF: predicated region fallthrough
CT: control target
= control target key end

     0   :  { %s2006_s0 = inlined_call_operand.vmem [shape: bf16[32,32], index: 0, kind: input, shape index: {}]   ;;  %s2007_s1 = inlined_call_operand.vmem [shape: bf16[32,32], index: 1, kind: input, shape index: {}]   ;;  %s2008_s2 = inlined_call_operand.vmem [shape: f32[32,1], index: 2, kind: input, shape index: {}]   ;;  %s2009_s3 = inlined_call_operand.vmem [shape: bf16[16,32], index: 3, kind: input, shape index: {}]   ;;  %s2010_s4 = inlined_call_operand.vmem [shape: f32[16,1], index: 4, kind: input, shape index: {}]   ;;  %s2011_s5 = inlined_call_operand.vmem [shape: bf16[8,16], index: 5, kind: input, shape index: {}]   ;;  %s2012_s6 = inlined_call_operand.vmem [shape: f32[8,1], index: 6, kind: input, shape index: {}]   ;;  %s2013_s7 = inlined_call_operand.vmem [shape: bf16[1,8], index: 7, kind: input, shape index: {}]   ;;  %s2014_s8 = inlined_call_operand.vmem [shape: bf16[1,32], index: 8, kind: input, shape index: {}]   ;;  %s2015_s9 = inlined_call_operand.<no memory space> [shape: f32[1,1], index: 9, kind: input, shape index: {}]   ;;  %s2016_s10 = inlined_call_operand.vmem [shape: bf16[512,64], index: 10, kind: input, shape index: {}]   ;;  %s2017_s11 = inlined_call_operand.vmem [shape: bf16[512,64], index: 11, kind: input, shape index: {}]   ;;  %s2018_s12 = inlined_call_operand.vmem [shape: pred[512], index: 12, kind: input, shape index: {}]   ;;  %s2019_s13 = inlined_call_operand.vmem [shape: pred[512], index: 13, kind: input, shape index: {}]   ;;  %s2020_s14 = inlined_call_operand.<no memory space> [shape: bf16[], index: 14, kind: input, shape index: {}]   ;;  %s2021_s15 = inlined_call_operand.hbm [shape: f32[4,1,128], index: 15, kind: output, shape index: {}]  }
   0x1   :  { %2031 = sst [smem:[#allocation15_spill]] %s2016_s10  ;;  %v20_v0 = vstv %s2020_s14  ;;  %v30_v1 = vstv %s2015_s9 }
   0x2   :  { %2032 = sst [smem:[#allocation16_spill]] %s2021_s15  ;;  %v1783_v2 = vunpack.i.l.bf16 %v20_v0  ;;  %31 = vst [vmem:[#allocation2] sm:$0x1] %v30_v1 }
   0x3   :  { %32 = vsyncpa [#allocation4], 0 }
   0x4   :  { %34 = vsyncpa [#allocation4 + $0x1], 0  ;;  %s1785_s22 = smov 0   ;;  %s1787_s23 = smov 0  }
   0x5   :  { %s1789_s24 = smov 0   ;;  %s1791_s25 = smov 0  }
   0x6 LB: > { %2033 = sst [smem:[#allocation8_spill]] %s1679_s22  ;;  %s1806_s9 = sadd.s32 4294967295, %s1691_s25   ;;  %s1691_s25 = sphi %s1791_s25, %s2048_s25   ;;  %s1687_s24 = sphi %s1789_s24, %s2050_s24   ;;  %s1683_s23 = sphi %s1787_s23, %s2052_s23   ;;  %s1679_s22 = sphi %s1785_s22, %s2051_s22  }
   0x7   : > { %2034 = sst [smem:[#allocation9_spill]] %s1687_s24  ;;  %s1408_s14 = sadd.s32 4294967294, %s1691_s25  }
   0x8   : > { %2035 = sst [smem:[#allocation10_spill]] %s1691_s25  ;;  %s1810_s26 = sadd.s32 1, %s1691_s25  }
   0x9   : > { %2036 = sst [smem:[#allocation11_spill]] %s1810_s26  ;;  %s369_s27 = sadd.s32 1, %s1687_s24 }
   0xa   : > { %s366_s28 = ssub.s32 %s1691_s25, %s1810_s26  ;;  %p379_p0 = scmp.ne.s32.totalorder %s1687_s24, %s1683_s23 }
   0xb   : > { %p367_p1 = scmp.eq.s32.totalorder %s366_s28, 0  ;;  %p380_p2 = scmp.eq.s32.totalorder %s1806_s9, 3 }
   0xc   : > { %p385_p3 = scmp.ne.s32.totalorder %s1683_s23, %s1679_s22  ;;  %p386_p4 = scmp.eq.s32.totalorder %s1408_s14, 3 }
   0xd   : > { %s1821_s29 = scalar_select %p367_p1, %s1687_s24, %s369_s27  }
   0xe   : > { %p1823_p5 = por %p380_p2, %p379_p0  ;;  %p1827_p6 = por %p386_p4, %p385_p3 }
   0xf   : > { %2037 = sst [smem:[#allocation12_spill]] %s1821_s29  ;;  %p1415_p7 = scmp.ge.s32.totalorder %s1691_s25, 1 }
  0x10   : > { %s2038_s30 = scalar_select %p1823_p5, 1, 0 }
  0x11   : > { %s2040_s16 = scalar_select %p1827_p6, 1, 0 }
  0x12   : > { %2039 = sst [smem:[#allocation13_spill]] %s2038_s30  ;;  %p476_p8 = scmp.lt.s32.totalorder %s1691_s25, 5 }
  0x13   : > { %2041 = sst [smem:[#allocation14_spill]] %s2040_s16 }
  0x14   : > { %p477_p9 = pnand %p1415_p7, %p476_p8 }
  0x16   : > { %480 = sbr.rel (%p477_p9) target bundleno = 982 (0x3d6), region = 76 }
  0x1d   : > { %p538_p10 = scmp.lt.s32.totalorder %s1806_s9, 3  ;;  %s1418_s17 = sshll.u32 %s1806_s9, 7  ;;  %v1616_v3 = vld [vmem:[%s2007_s1] sm:$0xff]   ;;  %vm899_vm0 = vcmask 261120   ;;  %v1034_v5 = vld [vmem:[%s2008_s2 + $0x10] sm:$0xff]  ;;  %v1693_v6 = vmov 0   ;;  %v1879_v24 = vpack.c.bf16 %v1783_v2, %v1783_v2 }
  0x1e   : > { %s572_s18 = sshrl.u32 %s1418_s17, 9  ;;  %s575_s19 = sand.u32 511, %s1418_s17   ;;  %1524 = vmatprep.mubr.msk.bf16.mxu0 %vm899_vm0, %v1616_v3  ;;  %v1032_v4 = vld [vmem:[%s2008_s2] sm:$0xff]  ;;  %1610 = vset.pattern.permute.xlu0 %v1693_v6  ;;  %v1033_v7 = vld [vmem:[%s2008_s2 + $0x8] sm:$0xff]  ;;  %v1035_v9 = vld [vmem:[%s2008_s2 + $0x18] sm:$0xff]  ;;  %v1694_v41 = vmov 0.0  }
  0x1f   : > { %s539_s14 = scalar_select %p538_p10, %s1806_s9, 3  ;;  %1611 = vset.pattern.permute.xlu1 %v1693_v6  ;;  %1038 = vperm.xlu0 %1610, %v1032_v4   ;;  %v1068_v15 = vld [vmem:[%s2010_s4] sm:$0xff]  ;;  %v1069_v16 = vld [vmem:[%s2010_s4 + $0x8] sm:$0xff]  ;;  %vm1695_vm3 = vmmov 0   ;;  %vm1139_vm4 = vcmask 130048   ;;  %vm1250_vm5 = vcmask 1043456  }
  0x20   : > { %p1419_p11 = scmp.gt.s32.totalorder %s572_s18, 0  ;;  %s576_s27 = sshrl.u32 %s575_s19, 7  ;;  %1048 = vperm.xlu1 %1611, %v1034_v5   ;;  %v1133_v26 = vld [vmem:[%s2012_s6] sm:$0xff]  ;;  %v1617_v37 = vld [vmem:[%s2007_s1 + $0x8] sm:$0xff]   ;;  %1536 = vmatprep.subr.bf16.mxu1 %v1694_v41  ;;  %vm1246_vm6 = vcmask 64512  }
  0x21   : > { %s1416_s28 = sshll.u32 %s539_s14, 2  ;;  %s2042_s10 = sld [smem:[#allocation15_spill]]  ;;  %v1294_v27 = vld [vmem:[#allocation2] sm:$0x1]  ;;  %v1623_v40 = vld [vmem:[%s2006_s0 + $0x8] sm:$0xff]   ;;  %1540 = vmatprep.mubr.msk.bf16.mxu1 %vm1695_vm3, %v1694_v41 }
  0x22   : > { %s579_s16 = sshrl.u32 %s576_s27, 2  ;;  %s2054_s18 = smov (%p1419_p11, %s572_s18), 0  ;;  %v1622_v38 = vld [vmem:[%s2006_s0] sm:$0xff]  }
  0x23   : > { %s1854_s14 = scalar_lea.vmem %s2017_s11, %s1416_s28  ;;  %s580_s24 = sand.u32 3, %s576_s27   ;;  %1043 = vperm.xlu0 %1610, %v1033_v7   ;;  %v1624_v60 = vld [vmem:[%s2009_s3] sm:$0xff]  }
  0x24   : > { %s578_s17 = scalar_lea.vmem %s2019_s13, %s2054_s18  ;;  %v583_v8 = vstv %s580_s24  ;;  %s720_s30 = scalar_lea.vmem %s2018_s12, %s2054_s18  ;;  %1053 = vperm.xlu1 %1611, %v1035_v9   ;;  %v1618_v21 = vld [vmem:[%s1854_s14] ss:$16 sps:$4 sm:$0xff]  }
  0x25   : > { %s581_s27 = scalar_lea.vmem %s578_s17, %s579_s16  ;;  %v584_v10 = vshll.u32 %v583_v8, 3  ;;  %v1620_v25 = vld [vmem:[%s1854_s14 + $0x20] ss:$16 sps:$4 sm:$0xff]   ;;  %s536_s24 = sand.u32 1, %s1683_s23  }
  0x26   : > { %v582_v12 = vld [vmem:[%s581_s27] ss:$0 sm:$0xff]  ;;  %s537_s29 = scalar_lea.vmem [#allocation3], %s536_s24  ;;  %s2044_s20 = sld [smem:[#allocation16_spill]] }
  0x27   : > { %s1843_s26 = scalar_lea.vmem %s2042_s10, %s1416_s28  ;;  %s723_s10 = scalar_lea.vmem %s720_s30, %s579_s16  ;;  %v585_v14 = vshra.s32 %v582_v12, %v584_v10  ;;  %1072 = vperm.xlu0 %1610, %v1068_v15   ;;  %v1132_v9 = vld [vmem:[%s2011_s5] sm:$0xf] }
  0x28   : > { %v724_v11 = vld [vmem:[%s723_s10] ss:$0 sm:$0xff]  ;;  %1077 = vperm.xlu1 %1611, %v1069_v16   ;;  %s1463_s16 = sshll.u32 %s1806_s9, 4  ;;  %s1319_s22 = sshll.u32 %s537_s29, 4  ;;  %s1966_s22 = int_to_ptr.vmem [resolvable:$true] %s1319_s22 }
  0x29   : > { %v727_v13 = vshra.s32 %v724_v11, %v584_v10  ;;  %v586_v18 = vand.u32 255, %v585_v14  ;;  %v1612_v19 = vld [vmem:[%s1843_s26] ss:$16 sps:$4 sm:$0xff]   ;;  %s1307_s9 = scalar_lea.sflag [#allocation4], %s536_s24  ;;  %s1629_s28 = scalar_lea.vmem %s1966_s22, 16 }
  0x2a   : > { %v1614_v20 = vld [vmem:[%s1843_s26 + $0x20] ss:$16 sps:$4 sm:$0xff]   ;;  %p1630_p12 = scmp.ne.s32.totalorder %s1966_s22, %s1629_s28  ;;  %s1696_s27 = smov [#allocation3]  }
  0x2b   : > { %v728_v17 = vand.u32 255, %v727_v13  ;;  %v596_v23 = vcvt.s32.f32 %v586_v18  ;;  %1136 = vperm.xlu0 %1610, %v1133_v26   ;;  %v1625_v10 = vld [vmem:[%s1854_s14 + $0x40] ss:$16 sps:$4 sm:$0xff]   ;;  %s1633_s10 = sshll.u32 %s1696_s27, 4  ;;  %s1634_s10 = int_to_ptr.vmem [resolvable:$false] %s1633_s10 }
  0x2c   : > { %1297 = vperm.xlu1 %1611, %v1294_v27   ;;  %v1626_v11 = vld [vmem:[%s1843_s26 + $0x40] ss:$16 sps:$4 sm:$0xff]   ;;  %s1964_s19 = scalar_lea.hbm %s2044_s20, %s1463_s16  ;;  %p1631_p13 = pnand %p1630_p12, %p1823_p5 }
  0x2d   : > { %v738_v22 = vcvt.s32.f32 %v728_v17  ;;  %v1887_v29 = vpack.c.bf16 %v596_v23, %v596_v23  ;;  %v1627_v14 = vld [vmem:[%s1854_s14 + $0x60] ss:$16 sps:$4 sm:$0xff]   ;;  %s1635_s21 = scalar_lea.vmem %s1634_s10, 32  ;;  %p1636_p1 = scmp.lt.s32.totalorder %s1966_s22, %s1634_s10 }
  0x2e   : > { %v1628_v15 = vld [vmem:[%s1843_s26 + $0x60] ss:$16 sps:$4 sm:$0xff]   ;;  %p1632_p0 = pneg %p1631_p13  ;;  %p1637_p2 = scmp.lt.s32.totalorder %s1635_s21, %s1629_s28 }
  0x2f   : > { %v1885_v28 = vpack.c.bf16 %v738_v22, %v738_v22  ;;  %vm602_vm2 = vcmp.ne.s16.totalorder %v1887_v29, 0 }
  0x30   : > { %v603_v32 = vsel %vm602_vm2, %v1618_v21, %v1879_v24  ;;  %v634_v33 = vsel %vm602_vm2, %v1620_v25, %v1879_v24  ;;  %v666_v12 = vsel %vm602_vm2, %v1625_v10, %v1879_v24  ;;  %v698_v16 = vsel %vm602_vm2, %v1627_v14, %v1879_v24  ;;  %p1638_p3 = por %p1637_p2, %p1636_p1 }
  0x31   : > { %vm744_vm1 = vcmp.ne.s16.totalorder %v1885_v28, 0  ;;  %1473 = vst [vmem:[#allocation5] sm:$0xff] %v603_v32   ;;  %1477 = vst [vmem:[#allocation5 + $0x8] sm:$0xff] %v634_v33  }
  0x32   : > { %v745_v30 = vsel %vm744_vm1, %v1612_v19, %v1879_v24  ;;  %v776_v31 = vsel %vm744_vm1, %v1614_v20, %v1879_v24  ;;  %v808_v13 = vsel %vm744_vm1, %v1626_v11, %v1879_v24  ;;  %1481 = vst [vmem:[#allocation5 + $0x10] sm:$0xff] %v666_v12   ;;  %v840_v17 = vsel %vm744_vm1, %v1628_v15, %v1879_v24  ;;  %v1190_v24 = vld [vmem:[%s2014_s8] sm:$0x1]  ;;  %p1639_p4 = pnand %p1638_p3, %p1632_p0 }
  0x33   : > { %1489 = vst [vmem:[#allocation6] sm:$0xff] %v745_v30   ;;  %1493 = vst [vmem:[#allocation6 + $0x8] sm:$0xff] %v776_v31  }
  0x34   : > { %1497 = vst [vmem:[#allocation6 + $0x10] sm:$0xff] %v808_v13   ;;  %1485 = vst [vmem:[#allocation5 + $0x18] sm:$0xff] %v698_v16  }
  0x35   : > { %1501 = vst [vmem:[#allocation6 + $0x18] sm:$0xff] %v840_v17  }
  0x38   : > { %v1619_v36 = vld [vmem:[#allocation5] sm:$0xff]   ;;  %v1621_v39 = vld [vmem:[#allocation5 + $0x8] sm:$0xff]  }
  0x39   : > { %v861_v18 = vld [vmem:[#allocation5 + $0x10] sm:$0xf]  ;;  %v862_v19 = vld [vmem:[#allocation5 + $0x14] sm:$0xf] }
  0x3a   : > { %v1613_v34 = vld [vmem:[#allocation6] sm:$0xff]   ;;  %v1615_v35 = vld [vmem:[#allocation6 + $0x8] sm:$0xff]  }
  0x3b   : > { %1520 = vmatprep.subr.bf16.mxu0 %v1613_v34  ;;  %v865_v20 = vld [vmem:[#allocation6 + $0x10] sm:$0xf]  ;;  %v866_v21 = vld [vmem:[#allocation6 + $0x14] sm:$0xf]  ;;  %v863_v26 = vld [vmem:[#allocation5 + $0x18] sm:$0xf] }
  0x3c   : > { %1521 = vmatpush3.bf16.msra.mxu0 %v1613_v34  ;;  %v1185_v22 = vmul.bf16 %v865_v20, %v861_v18  ;;  %v1186_v23 = vmul.bf16 %v866_v21, %v862_v19  ;;  %v864_v27 = vld [vmem:[#allocation5 + $0x1c] sm:$0xf]  ;;  %v867_v30 = vld [vmem:[#allocation6 + $0x18] sm:$0xf] }
  0x3d   : > { %1522 = vmatprep.subr.bf16.mxu0 %v1615_v35  ;;  %v868_v31 = vld [vmem:[#allocation6 + $0x1c] sm:$0xf]  ;;  %v1187_v32 = vmul.bf16 %v867_v30, %v863_v26 }
  0x3e   : > { %v1459_v25 = vcombine.low %v1185_v22, %v1186_v23  ;;  %v1188_v29 = vmul.bf16 %v868_v31, %v864_v27 }
  0x40   : > { %1523 = vmatpush3.bf16.msra.mxu0 %v1615_v35  ;;  %v1460_v28 = vcombine.low %v1187_v32, %v1188_v29 }
  0x41   : > { %1528 = vmatprep.subr.bf16.mxu0 %v1619_v36 }
  0x43   : > { %1525 = vmatmul.mubr.msk.bf16.vlgmr.msra.gmra.mrb[0].mxu0 %vm899_vm0, %v1617_v37 }
  0x44   : > { %1529 = vmatpush3.bf16.msra.mxu0 %v1619_v36  ;;  %1532 = vmatprep.mubr.msk.bf16.mxu0 %vm899_vm0, %v1622_v38 }
  0x45   : > { %1530 = vmatprep.subr.bf16.mxu0 %v1621_v39 }
  0x48   : > { %1531 = vmatpush3.bf16.msra.mxu0 %v1621_v39 }
  0x49   : > { %1550 = vmatprep.subr.bf16.mxu0 %v1694_v41 }
  0x4f   : > { %1533 = vmatmul.mubr.msk.bf16.vlgmr.msra.gmra.mrb[0].mxu0 %vm899_vm0, %v1623_v40 }
  0x50   : > { %1554 = vmatprep.mubr.msk.bf16.mxu0 %vm1695_vm3, %v1694_v41  ;;  %1551 = vmatpush3.bf16.msra.mxu0 %v1459_v25 }
  0x51   : > { %1552 = vmatprep.subr.bf16.mxu0 %v1694_v41 }
  0x54   : > { %1553 = vmatpush3.bf16.msra.mxu0 %v1460_v28 }
  0x57   : > { %1555 = vmatmul.mubr.msk.bf16.vlgmr.msra.gmra.mrb[4].mxu0 %vm899_vm0, %v1190_v24 }
  0x9e   : > { %v1039_v43 = vpop.permute.xlu0 %1038 }
  0x9f   : > { %v1049_v42 = vpop.permute.xlu1 %1048 }
  0xa2   : > { %v1044_v50 = vpop.permute.xlu0 %1043 }
  0xa3   : > { %v1054_v47 = vpop.permute.xlu1 %1053 }
  0xa6   : > { %v1073_v61 = vpop.permute.xlu0 %1072 }
  0xa7   : > { %v1078_v1 = vpop.permute.xlu1 %1077 }
  0xaa   : > { %v1137_v33 = vpop.permute.xlu0 %1136 }
 0x122   : > { %v1534_v44 = vpop.f32.mrb[0].mxu0 }
 0x123   : > { %v1058_v45 = vadd.f32 %v1534_v44, %v1049_v42  ;;  %v1017_v46 = vpop.f32.mrb[1].mxu0  ;;  %v1189_v42 = vld [vmem:[%s2013_s7] sm:$0x1] }
 0x124   : > { %v1056_v48 = vadd.f32 %v1039_v43, %v1017_v46  ;;  %v1535_v49 = vpop.f32.mrb[2].mxu0 }
 0x125   : > { %v1059_v51 = vadd.f32 %v1535_v49, %v1054_v47  ;;  %v1020_v52 = vpop.f32.mrb[3].mxu0  ;;  %v1062_v54 = vmax.f32 %v1058_v45, 0.0  ;;  %v1300_v47 = vlaneseq }
 0x126   : > { %v1057_v53 = vadd.f32 %v1044_v50, %v1020_v52  ;;  %v1060_v56 = vmax.f32 %v1056_v48, 0.0  ;;  %v1298_v50 = vpop.permute.xlu1 %1297 }
 0x127   : > { %v1063_v55 = vmax.f32 %v1059_v51, 0.0  ;;  %v1301_v48 = vshrl.u32 %v1300_v47, 7 }
 0x128   : > { %v1061_v57 = vmax.f32 %v1057_v53, 0.0 }
 0x129   : > { %v1065_v58 = vpack.c.bf16 %v1063_v55, %v1062_v54  ;;  %v1302_v49 = vsub.s32 0, %v1301_v48 }
 0x12a   : > { %v1064_v59 = vpack.c.bf16 %v1061_v57, %v1060_v56  ;;  %v1240_v43 = vpop.f32.mrb[4].mxu0 }
 0x12b   : > { %v1556_v44 = vpop.f32.mrb[5].mxu0  ;;  %v1303_v52 = vrot.slane %v1298_v50, %v1302_v49 }
 0x12c   : > { %1537 = vmatpush3.bf16.msra.mxu1 %v1064_v59  ;;  %v1243_v45 = vpop.f32.mrb[6].mxu0 }
 0x12d   : > { %1538 = vmatprep.subr.bf16.mxu1 %v1694_v41  ;;  %v1557_v46 = vpop.f32.mrb[7].mxu0 }
 0x130   : > { %1539 = vmatpush3.bf16.msra.mxu1 %v1065_v58 }
 0x131   : > { %1544 = vmatprep.subr.bf16.mxu1 %v1694_v41 }
 0x133   : > { %1541 = vmatmul.mubr.msk.bf16.vlgmr.msra.gmra.mrb[0].mxu1 %vm899_vm0, %v1624_v60 }
 0x134   : > { %1546 = vmatprep.mubr.msk.bf16.mxu1 %vm1695_vm3, %v1694_v41 }
 0x206   : > { %v1122_v62 = vpop.f32.mrb[0].mxu1 }
 0x207   : > { %v1123_v63 = vadd.f32 %v1122_v62, %v1073_v61  ;;  %v1542_v0 = vpop.f32.mrb[1].mxu1 }
 0x208   : > { %v1125_v3 = vpop.f32.mrb[2].mxu1 }
 0x209   : > { %v1126_v4 = vadd.f32 %v1125_v3, %v1078_v1  ;;  %v1543_v5 = vpop.f32.mrb[3].mxu1  ;;  %v1129_v6 = vmax.f32 %v1123_v63, 0.0 }
 0x20b   : > { %v1130_v7 = vmax.f32 %v1126_v4, 0.0 }
 0x20d   : > { %v1131_v8 = vpack.c.bf16 %v1130_v7, %v1129_v6 }
 0x20f   : > { %1545 = vmatpush3.bf16.msra.mxu1 %v1131_v8 }
 0x210   : > { %1558 = vmatprep.subr.bf16.mxu1 %v1694_v41 }
 0x212   : > { %1547 = vmatmul.mubr.msk.bf16.vlgmr.msra.gmra.mrb[4].mxu1 %vm1139_vm4, %v1132_v9 }
 0x213   : > { %1560 = vmatprep.mubr.msk.bf16.mxu1 %vm1695_vm3, %v1694_v41 }
 0x2e5   : > { %v1177_v34 = vpop.f32.mrb[4].mxu1 }
 0x2e6   : > { %v1178_v35 = vadd.f32 %v1177_v34, %v1137_v33  ;;  %v1548_v36 = vpop.f32.mrb[5].mxu1 }
 0x2e7   : > { %v1180_v37 = vpop.f32.mrb[6].mxu1 }
 0x2e8   : > { %v1183_v38 = vmax.f32 %v1178_v35, 0.0  ;;  %v1549_v39 = vpop.f32.mrb[7].mxu1 }
 0x2ea   : > { %v1184_v40 = vpack.c.bf16 %v1183_v38, %v1183_v38 }
 0x2ec   : > { %v1252_v41 = vsel %vm1250_vm5, %v1184_v40, 0 }
 0x2ed   : > { %1559 = vmatpush3.bf16.msra.mxu1 %v1252_v41 }
 0x2f0   : > { %1561 = vmatmul.mubr.msk.bf16.vlgmr.msra.gmra.mrb[8].mxu1 %vm1246_vm6, %v1189_v42 }
 0x3c3   : > { %v1288_v51 = vpop.f32.mrb[8].mxu1 }
 0x3c4   : > { %v1289_v53 = vadd.f32 %v1288_v51, %v1240_v43  ;;  %v1562_v54 = vpop.f32.mrb[9].mxu1 }
 0x3c5   : > { %v1291_v55 = vpop.f32.mrb[10].mxu1 }
 0x3c6   : > { %v1304_v56 = vadd.f32 %v1303_v52, %v1289_v53  ;;  %v1563_v57 = vpop.f32.mrb[11].mxu1 }
 0x3c8   : > { %1305 = vst [vmem:[%s537_s29] sm:$0x1] %v1304_v56 }
 0x3c9   : > { %1642 = shalt.err (!%p1639_p4)
}
 0x3ca   : > { %s1643_s26 = scalar_lea.hbm %s1964_s19, 16  ;;  %s1647_s18 = scalar_lea.hbm %s2044_s20, 64 }
 0x3cb   : > { %p1644_p7 = scmp.ne.s32.totalorder %s1964_s19, %s1643_s26  ;;  %p1648_p10 = scmp.lt.u32.totalorder %s1964_s19, %s2044_s20 }
 0x3cc   : > { %p1649_p11 = scmp.lt.u32.totalorder %s1647_s18, %s1643_s26  ;;  %p1651_p13 = scmp.lt.u32.totalorder %s1643_s26, %s1964_s19 }
 0x3cd   : > { %p1645_p8 = pnand %p1644_p7, %p1823_p5 }
 0x3ce   : > { %p1650_p12 = por %p1649_p11, %p1648_p10 }
 0x3cf   : > { %p1646_p9 = pneg %p1645_p8 }
 0x3d0   : > { %p1652_p0 = por %p1651_p13, %p1650_p12 }
 0x3d2   : > { %p1653_p1 = pnand %p1652_p0, %p1646_p9 }
 0x3d4   : > { %1656 = shalt.err (!%p1653_p1)
}
 0x3d5   : > { %1568 = dma.vmem_to_hbm [thread:$0]  (%p1823_p5), %s1966_s22, 16, %s1964_s19, %s1307_s9  }
 0x3d6 PF: > { %s2045_s29 = sld [smem:[#allocation10_spill]]  ;;  %s2046_s25 = sld [smem:[#allocation8_spill]] }
 0x3dc   : > { %p1574_p2 = scmp.ge.s32.totalorder %s2045_s29, 2  ;;  %s1331_s28 = sand.u32 1, %s2046_s25  }
 0x3dd   : > { %s1332_s27 = scalar_lea.sflag [#allocation4], %s1331_s28 }
 0x3de   : > { %p1571_p3 = pnand %p1574_p2, %p1827_p6 }
 0x3e0   : > { %1674 = dma.done.wait (!%p1571_p3), %s1332_s27, 16  }
 0x3e1   : > { %1676 = vsyncadd (!%p1571_p3), %s1332_s27, 4294967280  ;;  %s2048_s25 = sld [smem:[#allocation11_spill]]  ;;  %s2049_s10 = sld [smem:[#allocation9_spill]] }
 0x3e2   : > { %s2050_s24 = sld [smem:[#allocation12_spill]]  ;;  %s2051_s22 = smov %s1683_s23 }
 0x3e7   : > { %p37_p4 = scmp.ge.s32.totalorder %s2048_s25, 6   ;;  %s2052_s23 = smov %s2049_s10 }
 0x3e9   :  { %39 = sbr.rel (!%p37_p4) target bundleno = 6 (0x6), region = 152 }
 0x3f0   :  { %1336 = vsyncpa [#allocation4], 1 }
 0x3f1   :  { %1338 = vsyncpa [#allocation4 + $0x1], 1 }

</bundles_post_ra>
